<compile_context>
chip_gen: v7x
topology: tpu7x:2x2x1
jax: 0.10.0
libtpu: 0.0.40
codegen_flags: <defaults>
</compile_context>

<pallas_src>
import functools

import jax
import jax.numpy as jnp
from jax import lax
from jax.experimental import pallas as pl
from jax.experimental.pallas import tpu as pltpu

_LN_EPS = 1e-5


def _round_up(x, m):
    return ((x + m - 1) // m) * m


def _sublane_multiple(dtype):
    isz = jnp.dtype(dtype).itemsize
    return 8 if isz >= 4 else (16 if isz == 2 else 32)


def _physical_vmem_bytes():
    try:
        return int(pltpu.get_tpu_info().vmem_capacity_bytes)
    except Exception:
        return 64 << 20          # conservative lower bound (v7x per-TC VMEM)


def _vmem_limit(est_bytes):
    cap = (_physical_vmem_bytes() * 9) // 10   # never request > ~90% of physical
    return int(min(max(est_bytes, 32 << 20), cap))


def _layer_norm_f32(x_f32, gamma_f32, beta_f32):
    mean = jnp.mean(x_f32, axis=-1, keepdims=True)
    cent = x_f32 - mean
    var = jnp.mean(cent * cent, axis=-1, keepdims=True)
    return cent * lax.rsqrt(var + _LN_EPS) * gamma_f32 + beta_f32


# --------------------------------------------------------------------------
# Attention:  out = x + Proj(concat_h softmax(mask(Q_h K_h^T / sqrt(hs))) V_h)
#             with Q/K/V computed from LayerNorm(x); fused QKV / output proj.
# --------------------------------------------------------------------------
def _attn_kernel(x_ref, g_ref, b_ref, wqkv_ref, wo_ref, bo_ref, o_ref, *,
                 n_head, head_size):
    xf = x_ref[0].astype(jnp.float32)                       # (T, C)
    xn = _layer_norm_f32(xf, g_ref[...].astype(jnp.float32),
                         b_ref[...].astype(jnp.float32))

    cdt = wqkv_ref.dtype                                    # MXU operand dtype
    T, C = xf.shape
    hs = head_size
    scale = 1.0 / (hs ** 0.5)

    # Fused QKV projection: one lane-dense (T,C)@(C,3C) matmul on the MXU.
    qkv = jnp.dot(xn.astype(cdt), wqkv_ref[...],
                  preferred_element_type=jnp.float32)       # (T, 3C) f32

    row = lax.broadcasted_iota(jnp.int32, (T, T), 0)
    col = lax.broadcasted_iota(jnp.int32, (T, T), 1)
    causal = row >= col
    neg_inf = jnp.float32(-jnp.inf)

    heads = []
    for h in range(n_head):
        q = qkv[:, h * hs:(h + 1) * hs].astype(cdt)
        k = qkv[:, C + h * hs:C + (h + 1) * hs].astype(cdt)
        v = qkv[:, 2 * C + h * hs:2 * C + (h + 1) * hs].astype(cdt)
        # QK^T via dot_general contracting the last dim of both: no k.T
        # transpose / XLU relayout, native-dtype operands, f32 accumulation.
        s = lax.dot_general(q, k, (((1,), (1,)), ((), ())),
                            preferred_element_type=jnp.float32) * scale
        s = jnp.where(causal, s, neg_inf)
        s = s - jnp.max(s, axis=-1, keepdims=True)
        p = jnp.exp(s)
        denom = jnp.sum(p, axis=-1, keepdims=True)
        oh = jnp.dot(p.astype(cdt), v, preferred_element_type=jnp.float32)
        # Deferred softmax normalization: scale the (T,hs) result instead of
        # dividing the (T,T) probabilities (exact reciprocal keeps f32 parity).
        oh = oh * pl.reciprocal(denom, approx=False)
        heads.append(oh.astype(cdt))

    # Fused output projection of the concatenated heads: one (T,C)@(C,C) matmul.
    y = jnp.dot(jnp.concatenate(heads, axis=-1), wo_ref[...],
                preferred_element_type=jnp.float32)
    y = y + bo_ref[...].astype(jnp.float32)
    o_ref[0] = (xf + y).astype(o_ref.dtype)                 # residual (pre-LN x)


def _mha_residual(x, ln_g, ln_b, w_qkv, wo, bo, *, n_head):
    B, T, C = x.shape
    hs = C // n_head
    itemsize = jnp.dtype(x.dtype).itemsize
    wsize = jnp.dtype(w_qkv.dtype).itemsize

    kernel = functools.partial(_attn_kernel, n_head=n_head, head_size=hs)

    # TODO(synk): for long T / large C, tile T flash-style (online softmax,
    # parallel query-tile grid axis) and single-buffer the constant weight
    # blocks (pipeline_mode=pl.Buffered(1)) to stay inside v7x's 64 MiB VMEM.
    vmem_est = (2 * 2 * T * C * itemsize                 # x/out tiles, double-buffered
                + 2 * (4 * C * C + 2 * C) * wsize        # Wqkv/Wo/bo, double-buffered
                + (6 * T * C + 6 * T * T) * 4            # qkv + per-head f32 temporaries
                + (4 << 20))
    vmem_limit = _vmem_limit(vmem_est)

    cost = pl.CostEstimate(
        flops=B * (8 * T * C * C + 4 * T * T * C),
        transcendentals=B * (n_head * T * T + n_head * T + T),
        bytes_accessed=2 * B * T * C * itemsize + (4 * C * C + 2 * C) * wsize,
    )

    return pl.pallas_call(
        kernel,
        out_shape=jax.ShapeDtypeStruct((B, T, C), x.dtype),
        grid_spec=pltpu.PrefetchScalarGridSpec(
            num_scalar_prefetch=0,
            grid=(B,),
            in_specs=[
                pl.BlockSpec((1, T, C), lambda b: (b, 0, 0)),   # x
                pl.BlockSpec((1, C), lambda b: (0, 0)),         # ln1 gamma
                pl.BlockSpec((1, C), lambda b: (0, 0)),         # ln1 beta
                pl.BlockSpec((C, 3 * C), lambda b: (0, 0)),     # fused Wqkv
                pl.BlockSpec((C, C), lambda b: (0, 0)),         # Wo (concat heads)
                pl.BlockSpec((1, C), lambda b: (0, 0)),         # bo
            ],
            out_specs=pl.BlockSpec((1, T, C), lambda b: (b, 0, 0)),
        ),
        compiler_params=pltpu.CompilerParams(
            dimension_semantics=("parallel",),
            vmem_limit_bytes=vmem_limit),
        cost_estimate=cost,
    )(x, ln_g, ln_b, w_qkv, wo, bo)


# --------------------------------------------------------------------------
# FFN:  out = x + relu(LN2(x) @ W1 + b1) @ W2 + b2
#       (W1/W2 resident when they fit; otherwise H streamed in 128-multiple
#        chunks on an "arbitrary" reduction axis with an f32 VMEM accumulator)
# --------------------------------------------------------------------------
def _ffn_kernel(x_ref, g_ref, b_ref, w1_ref, b1_ref, w2_ref, b2_ref, o_ref,
                xn_sc, acc_sc):
    j = pl.program_id(1)

    @pl.when(j == 0)
    def _():
        xf = x_ref[...].astype(jnp.float32)
        xn = _layer_norm_f32(xf, g_ref[...].astype(jnp.float32),
                             b_ref[...].astype(jnp.float32))
        xn_sc[...] = xn.astype(xn_sc.dtype)       # cached in weight dtype (bf16-ready)
        acc_sc[...] = jnp.zeros_like(acc_sc)

    h = jnp.dot(xn_sc[...], w1_ref[...], preferred_element_type=jnp.float32)
    h = jnp.maximum(h + b1_ref[...].astype(jnp.float32), 0.0)   # bias + ReLU in f32
    acc_sc[...] += jnp.dot(h.astype(w2_ref.dtype), w2_ref[...],
                           preferred_element_type=jnp.float32)

    @pl.when(j == pl.num_programs(1) - 1)
    def _():
        # TODO(synk): training-mode dropout would use pltpu.prng_seed +
        # pltpu.prng_random_bits; eval-mode dropout is identity.
        y = acc_sc[...] + b2_ref[...].astype(jnp.float32)
        o_ref[...] = (x_ref[...].astype(jnp.float32) + y).astype(o_ref.dtype)


def _pick_hidden_chunk(H, C, wsize, block_h, vmem_cap):
    # If W1+W2 fit comfortably even double-buffered, keep them fully resident:
    # constant index maps mean they are DMA'd once and never re-streamed.
    if 4 * C * H * wsize <= vmem_cap // 3:
        return H
    # Otherwise stream: largest multiple-of-128 divisor of H that is <= block_h.
    best = None
    d = 128
    lim = min(block_h, H)
    while d <= lim:
        if H % d == 0:
            best = d
        d += 128
    # No legal 128-multiple chunk (H not a multiple of 128): the (8,128) block
    # rule forces the full-H block anyway.
    return best if best is not None else H


def _ffn_residual(x2d, ln_g, ln_b, w1, b1, w2, b2, *, block_m, block_h):
    M, C = x2d.shape
    H = w1.shape[1]
    itemsize = jnp.dtype(x2d.dtype).itemsize
    wsize = jnp.dtype(w1.dtype).itemsize

    # Big MXU/HBM-friendly row tile (when H is chunked, weight traffic scales
    # as M/bm, so bigger bm => less re-streaming).  Sublane multiple depends on
    # dtype packing (8 f32 / 16 bf16 / 32 int8).  No host-side padding: the
    # grid uses cdiv and Pallas masks the partial last row tile.
    sub = _sublane_multiple(x2d.dtype)
    bm = min(_round_up(block_m, sub), _round_up(M, sub))
    grid_m = pl.cdiv(M, bm)

    vmem_cap = (_physical_vmem_bytes() * 9) // 10
    bh = _pick_hidden_chunk(H, C, wsize, block_h, vmem_cap)
    grid_h = H // bh

    vmem_est = (2 * 2 * bm * C * itemsize              # x + out tiles, double-buffered
                + 2 * (C * bh + bh * C + bh) * wsize   # W1/W2/b1 chunks, double-buffered
                + 3 * C * wsize                        # gamma / beta / b2
                + bm * C * wsize + bm * C * 4          # xn + acc scratch
                + 2 * bm * bh * 4                      # hidden intermediate
                + (4 << 20))                           # slack
    vmem_limit = _vmem_limit(vmem_est)

    weight_streams = 1 if grid_h == 1 else grid_m
    cost = pl.CostEstimate(
        flops=4 * M * C * H + 6 * M * H + 10 * M * C,
        transcendentals=M,
        bytes_accessed=2 * M * C * itemsize
        + weight_streams * (2 * C * H + H + 3 * C) * wsize,
    )

    return pl.pallas_call(
        _ffn_kernel,
        out_shape=jax.ShapeDtypeStruct((M, C), x2d.dtype),
        grid_spec=pltpu.PrefetchScalarGridSpec(
            num_scalar_prefetch=0,
            grid=(grid_m, grid_h),
            in_specs=[
                pl.BlockSpec((bm, C), lambda i, j: (i, 0)),   # x row tile
                pl.BlockSpec((1, C), lambda i, j: (0, 0)),    # ln2 gamma
                pl.BlockSpec((1, C), lambda i, j: (0, 0)),    # ln2 beta
                pl.BlockSpec((C, bh), lambda i, j: (0, j)),   # W1 chunk
                pl.BlockSpec((1, bh), lambda i, j: (0, j)),   # b1 chunk
                pl.BlockSpec((bh, C), lambda i, j: (j, 0)),   # W2 chunk
                pl.BlockSpec((1, C), lambda i, j: (0, 0)),    # b2
            ],
            out_specs=pl.BlockSpec((bm, C), lambda i, j: (i, 0)),
            scratch_shapes=[
                pltpu.VMEM((bm, C), w1.dtype),      # cached LN2(x), weight dtype
                pltpu.VMEM((bm, C), jnp.float32),   # f32 accumulator
            ],
        ),
        compiler_params=pltpu.CompilerParams(
            dimension_semantics=("parallel", "arbitrary"),
            vmem_limit_bytes=vmem_limit),
        cost_estimate=cost,
    )(x2d, ln_g, ln_b, w1, b1, w2, b2)


# --------------------------------------------------------------------------
# Block wrapper + params + reference
# --------------------------------------------------------------------------
@functools.partial(jax.jit, static_argnames=("n_head", "block_m", "block_h"))
def transformer_block(x, params, *, n_head, block_m=512, block_h=512):
    B, T, C = x.shape
    y = _mha_residual(x, params["ln1_g"], params["ln1_b"],
                      params["w_qkv"], params["wo"], params["bo"],
                      n_head=n_head)
    y2d = _ffn_residual(y.reshape(B * T, C),
                        params["ln2_g"], params["ln2_b"],
                        params["w1"], params["b1"], params["w2"], params["b2"],
                        block_m=block_m, block_h=block_h)
    return y2d.reshape(B, T, C)


def init_block_params(key, n_embd, n_head):
    """PyTorch-style init: Linear weights/biases ~ U(-1/sqrt(fan_in), ...)."""
    del n_head
    C = n_embd
    H = 4 * C
    ks = jax.random.split(key, 7)
    bc = 1.0 / float(C) ** 0.5
    bhh = 1.0 / float(H) ** 0.5
    u = lambda k, shape, b: jax.random.uniform(k, shape, jnp.float32, -b, b)
    return dict(
        ln1_g=jnp.ones((1, C), jnp.float32), ln1_b=jnp.zeros((1, C), jnp.float32),
        ln2_g=jnp.ones((1, C), jnp.float32), ln2_b=jnp.zeros((1, C), jnp.float32),
        w_qkv=u(ks[0], (C, 3 * C), bc),   # [Q | K | V], heads concatenated per part
        wo=u(ks[1], (C, C), bc),          # rows indexed by concatenated head outputs
        bo=u(ks[2], (1, C), bc),
        w1=u(ks[3], (C, H), bc), b1=u(ks[4], (1, H), bc),
        w2=u(ks[5], (H, C), bhh), b2=u(ks[6], (1, C), bhh),
    )


def block_reference(x, p, n_head):
    B, T, C = x.shape
    hs = C // n_head

    def ln(z, g, b):
        m = jnp.mean(z, -1, keepdims=True)
        v = jnp.mean((z - m) ** 2, -1, keepdims=True)
        return (z - m) / jnp.sqrt(v + _LN_EPS) * g + b

    xn = ln(x, p["ln1_g"][0], p["ln1_b"][0])
    qkv = xn @ p["w_qkv"]                                  # (B, T, 3C)
    q, k, v = jnp.split(qkv, 3, axis=-1)
    q = q.reshape(B, T, n_head, hs).transpose(0, 2, 1, 3)
    k = k.reshape(B, T, n_head, hs).transpose(0, 2, 1, 3)
    v = v.reshape(B, T, n_head, hs).transpose(0, 2, 1, 3)
    att = jnp.einsum("bhqd,bhkd->bhqk", q, k) / (hs ** 0.5)
    mask = jnp.tril(jnp.ones((T, T), bool))
    att = jnp.where(mask[None, None], att, -jnp.inf)
    att = jax.nn.softmax(att, axis=-1)
    o = jnp.einsum("bhqk,bhkd->bhqd", att, v)
    o = o.transpose(0, 2, 1, 3).reshape(B, T, C)
    x = x + o @ p["wo"] + p["bo"][0]
    xn2 = ln(x, p["ln2_g"][0], p["ln2_b"][0])
    h = jnp.maximum(xn2 @ p["w1"] + p["b1"][0], 0.0)
    return x + h @ p["w2"] + p["b2"][0]


if __name__ == "__main__":
    B, T, n_embd, n_head = 2, 8, 32, 4
    dropout = 0.1  # eval mode => identity

    key = jax.random.PRNGKey(0)
    kx, kp = jax.random.split(key)
    x = jax.random.normal(kx, (B, T, n_embd), jnp.float32)
    params = init_block_params(kp, n_embd, n_head)

    out = transformer_block(x, params, n_head=n_head)
    out = jax.block_until_ready(out)

    ref = block_reference(x, params, n_head)
    assert out.shape == (B, T, n_embd)
    max_err = float(jnp.max(jnp.abs(out - ref)))
    assert jnp.allclose(out, ref, atol=1e-4, rtol=1e-4), f"max err {max_err}"

    print("KERNEL_OK")
</pallas_src>

<mosaic_0001>
module attributes {stable_mosaic.version = 11 : i64} {
  func.func @_ffn_kernel(%arg0: i32, %arg1: i32, %arg2: memref<16x32xf32, #tpu.memory_space<vmem>>, %arg3: memref<1x32xf32, #tpu.memory_space<vmem>>, %arg4: memref<1x32xf32, #tpu.memory_space<vmem>>, %arg5: memref<32x128xf32, #tpu.memory_space<vmem>>, %arg6: memref<1x128xf32, #tpu.memory_space<vmem>>, %arg7: memref<128x32xf32, #tpu.memory_space<vmem>>, %arg8: memref<1x32xf32, #tpu.memory_space<vmem>>, %arg9: memref<16x32xf32, #tpu.memory_space<vmem>>, %arg10: memref<16x32xf32, #tpu.memory_space<vmem>>, %arg11: memref<16x32xf32, #tpu.memory_space<vmem>>) attributes {dimension_semantics = [#tpu.dimension_semantics<parallel>, #tpu.dimension_semantics<arbitrary>], iteration_bounds = array<i64: 1, 1>, scalar_prefetch = 0 : i64, scratch_operands = 2 : i64, tpu.core_type = #tpu.core_type<tc>, window_params = [{transform_indices = @transform_0, window_bounds = array<i64: 16, 32>}, {pipeline_mode = #tpu.pipeline_mode<synchronous>, transform_indices = @transform_1, window_bounds = array<i64: 1, 32>}, {pipeline_mode = #tpu.pipeline_mode<synchronous>, transform_indices = @transform_2, window_bounds = array<i64: 1, 32>}, {transform_indices = @transform_3, window_bounds = array<i64: 32, 128>}, {transform_indices = @transform_4, window_bounds = array<i64: 1, 128>}, {transform_indices = @transform_5, window_bounds = array<i64: 128, 32>}, {pipeline_mode = #tpu.pipeline_mode<synchronous>, transform_indices = @transform_6, window_bounds = array<i64: 1, 32>}, {transform_indices = @transform_7, window_bounds = array<i64: 16, 32>}]} {
    %c0_i32 = arith.constant 0 : i32
    %0 = arith.cmpi eq, %arg1, %c0_i32 : i32
    %1 = arith.extui %0 : i1 to i32
    %c0_i32_0 = arith.constant 0 : i32
    %2 = arith.cmpi ne, %1, %c0_i32_0 : i32
    scf.if %2 {
      %c0_16 = arith.constant 0 : index
      %c0_17 = arith.constant 0 : index
      %19 = vector.load %arg2[%c0_16, %c0_17] : memref<16x32xf32, #tpu.memory_space<vmem>>, vector<16x32xf32>
      %c0_18 = arith.constant 0 : index
      %c0_19 = arith.constant 0 : index
      %20 = vector.load %arg3[%c0_18, %c0_19] : memref<1x32xf32, #tpu.memory_space<vmem>>, vector<1x32xf32>
      %c0_20 = arith.constant 0 : index
      %c0_21 = arith.constant 0 : index
      %21 = vector.load %arg4[%c0_20, %c0_21] : memref<1x32xf32, #tpu.memory_space<vmem>>, vector<1x32xf32>
      %cst_22 = arith.constant dense<0.000000e+00> : vector<16xf32>
      %22 = vector.multi_reduction <add>, %19, %cst_22 [1] : vector<16x32xf32> to vector<16xf32>
      %23 = vector.shape_cast %22 : vector<16xf32> to vector<16x1xf32>
      %cst_23 = arith.constant 3.200000e+01 : f32
      %24 = vector.broadcast %cst_23 : f32 to vector<16x1xf32>
      %25 = arith.divf %23, %24 : vector<16x1xf32>
      %26 = vector.broadcast %25 : vector<16x1xf32> to vector<16x32xf32>
      %27 = arith.subf %19, %26 : vector<16x32xf32>
      %28 = arith.mulf %27, %27 : vector<16x32xf32>
      %cst_24 = arith.constant dense<0.000000e+00> : vector<16xf32>
      %29 = vector.multi_reduction <add>, %28, %cst_24 [1] : vector<16x32xf32> to vector<16xf32>
      %30 = vector.shape_cast %29 : vector<16xf32> to vector<16x1xf32>
      %cst_25 = arith.constant 3.200000e+01 : f32
      %31 = vector.broadcast %cst_25 : f32 to vector<16x1xf32>
      %32 = arith.divf %30, %31 : vector<16x1xf32>
      %cst_26 = arith.constant 9.99999974E-6 : f32
      %33 = vector.broadcast %cst_26 : f32 to vector<16x1xf32>
      %34 = arith.addf %32, %33 : vector<16x1xf32>
      %35 = math.rsqrt %34 : vector<16x1xf32>
      %36 = vector.broadcast %35 : vector<16x1xf32> to vector<16x32xf32>
      %37 = arith.mulf %27, %36 : vector<16x32xf32>
      %38 = vector.broadcast %20 : vector<1x32xf32> to vector<16x32xf32>
      %39 = arith.mulf %37, %38 : vector<16x32xf32>
      %40 = vector.broadcast %21 : vector<1x32xf32> to vector<16x32xf32>
      %41 = arith.addf %39, %40 : vector<16x32xf32>
      %c0_27 = arith.constant 0 : index
      %c0_28 = arith.constant 0 : index
      %42 = vector.load %arg10[%c0_27, %c0_28] : memref<16x32xf32, #tpu.memory_space<vmem>>, vector<16x32xf32>
      tpu.vector_store %arg10[%c0_27, %c0_28], %41 {strides = array<i32>} : memref<16x32xf32, #tpu.memory_space<vmem>>, vector<16x32xf32>,
      %cst_29 = arith.constant 0.000000e+00 : f32
      %43 = vector.broadcast %cst_29 : f32 to vector<16x32xf32>
      %c0_30 = arith.constant 0 : index
      %c0_31 = arith.constant 0 : index
      %44 = vector.load %arg11[%c0_30, %c0_31] : memref<16x32xf32, #tpu.memory_space<vmem>>, vector<16x32xf32>
      tpu.vector_store %arg11[%c0_30, %c0_31], %43 {strides = array<i32>} : memref<16x32xf32, #tpu.memory_space<vmem>>, vector<16x32xf32>,
    } else {
    }
    %c0 = arith.constant 0 : index
    %c0_1 = arith.constant 0 : index
    %3 = vector.load %arg10[%c0, %c0_1] : memref<16x32xf32, #tpu.memory_space<vmem>>, vector<16x32xf32>
    %c0_2 = arith.constant 0 : index
    %c0_3 = arith.constant 0 : index
    %4 = vector.load %arg5[%c0_2, %c0_3] : memref<32x128xf32, #tpu.memory_space<vmem>>, vector<32x128xf32>
    %cst = arith.constant dense<0.000000e+00> : vector<16x128xf32>
    %5 = tpu.matmul %3, %4, %cst {dimension_numbers = #tpu.dot_dimension_numbers<[1], [0], [0], [1], [0, 0, 1, 1], [], []>} : vector<16x32xf32>, vector<32x128xf32>, vector<16x128xf32> -> vector<16x128xf32>
    %c0_4 = arith.constant 0 : index
    %c0_5 = arith.constant 0 : index
    %6 = vector.load %arg6[%c0_4, %c0_5] : memref<1x128xf32, #tpu.memory_space<vmem>>, vector<1x128xf32>
    %7 = vector.broadcast %6 : vector<1x128xf32> to vector<16x128xf32>
    %8 = arith.addf %5, %7 : vector<16x128xf32>
    %cst_6 = arith.constant 0.000000e+00 : f32
    %9 = vector.broadcast %cst_6 : f32 to vector<16x128xf32>
    %10 = arith.maximumf %8, %9 : vector<16x128xf32>
    %c0_7 = arith.constant 0 : index
    %c0_8 = arith.constant 0 : index
    %11 = vector.load %arg11[%c0_7, %c0_8] : memref<16x32xf32, #tpu.memory_space<vmem>>, vector<16x32xf32>
    %c0_9 = arith.constant 0 : index
    %c0_10 = arith.constant 0 : index
    %12 = vector.load %arg7[%c0_9, %c0_10] : memref<128x32xf32, #tpu.memory_space<vmem>>, vector<128x32xf32>
    %cst_11 = arith.constant dense<0.000000e+00> : vector<16x32xf32>
    %13 = tpu.matmul %10, %12, %cst_11 {dimension_numbers = #tpu.dot_dimension_numbers<[1], [0], [0], [1], [0, 0, 1, 1], [], []>} : vector<16x128xf32>, vector<128x32xf32>, vector<16x32xf32> -> vector<16x32xf32>
    %14 = arith.addf %11, %13 : vector<16x32xf32>
    %c0_12 = arith.constant 0 : index
    %c0_13 = arith.constant 0 : index
    %15 = vector.load %arg11[%c0_12, %c0_13] : memref<16x32xf32, #tpu.memory_space<vmem>>, vector<16x32xf32>
    tpu.vector_store %arg11[%c0_12, %c0_13], %14 {strides = array<i32>} : memref<16x32xf32, #tpu.memory_space<vmem>>, vector<16x32xf32>,
    %c0_i32_14 = arith.constant 0 : i32
    %16 = arith.cmpi eq, %arg1, %c0_i32_14 : i32
    %17 = arith.extui %16 : i1 to i32
    %c0_i32_15 = arith.constant 0 : i32
    %18 = arith.cmpi ne, %17, %c0_i32_15 : i32
    scf.if %18 {
      %c0_16 = arith.constant 0 : index
      %c0_17 = arith.constant 0 : index
      %19 = vector.load %arg11[%c0_16, %c0_17] : memref<16x32xf32, #tpu.memory_space<vmem>>, vector<16x32xf32>
      %c0_18 = arith.constant 0 : index
      %c0_19 = arith.constant 0 : index
      %20 = vector.load %arg8[%c0_18, %c0_19] : memref<1x32xf32, #tpu.memory_space<vmem>>, vector<1x32xf32>
      %21 = vector.broadcast %20 : vector<1x32xf32> to vector<16x32xf32>
      %22 = arith.addf %19, %21 : vector<16x32xf32>
      %c0_20 = arith.constant 0 : index
      %c0_21 = arith.constant 0 : index
      %23 = vector.load %arg2[%c0_20, %c0_21] : memref<16x32xf32, #tpu.memory_space<vmem>>, vector<16x32xf32>
      %24 = arith.addf %23, %22 : vector<16x32xf32>
      %c0_22 = arith.constant 0 : index
      %c0_23 = arith.constant 0 : index
      %25 = vector.load %arg9[%c0_22, %c0_23] : memref<16x32xf32, #tpu.memory_space<vmem>>, vector<16x32xf32>
      tpu.vector_store %arg9[%c0_22, %c0_23], %24 {strides = array<i32>} : memref<16x32xf32, #tpu.memory_space<vmem>>, vector<16x32xf32>,
    } else {
    }
    return
  }
  func.func @transform_0(%arg0: i32, %arg1: i32) -> (i32, i32) {
    %c0_i32 = arith.constant 0 : i32
    %c0_i32_0 = arith.constant 0 : i32
    return %arg0, %c0_i32 : i32, i32
  }
  func.func @transform_1(%arg0: i32, %arg1: i32) -> (i32, i32) {
    %c0_i32 = arith.constant 0 : i32
    %c0_i32_0 = arith.constant 0 : i32
    %c0_i32_1 = arith.constant 0 : i32
    return %c0_i32, %c0_i32_0 : i32, i32
  }
  func.func @transform_2(%arg0: i32, %arg1: i32) -> (i32, i32) {
    %c0_i32 = arith.constant 0 : i32
    %c0_i32_0 = arith.constant 0 : i32
    %c0_i32_1 = arith.constant 0 : i32
    return %c0_i32, %c0_i32_0 : i32, i32
  }
  func.func @transform_3(%arg0: i32, %arg1: i32) -> (i32, i32) {
    %c0_i32 = arith.constant 0 : i32
    %c0_i32_0 = arith.constant 0 : i32
    return %c0_i32, %arg1 : i32, i32
  }
  func.func @transform_4(%arg0: i32, %arg1: i32) -> (i32, i32) {
    %c0_i32 = arith.constant 0 : i32
    %c0_i32_0 = arith.constant 0 : i32
    return %c0_i32, %arg1 : i32, i32
  }
  func.func @transform_5(%arg0: i32, %arg1: i32) -> (i32, i32) {
    %c0_i32 = arith.constant 0 : i32
    %c0_i32_0 = arith.constant 0 : i32
    return %arg1, %c0_i32 : i32, i32
  }
  func.func @transform_6(%arg0: i32, %arg1: i32) -> (i32, i32) {
    %c0_i32 = arith.constant 0 : i32
    %c0_i32_0 = arith.constant 0 : i32
    %c0_i32_1 = arith.constant 0 : i32
    return %c0_i32, %c0_i32_0 : i32, i32
  }
  func.func @transform_7(%arg0: i32, %arg1: i32) -> (i32, i32) {
    %c0_i32 = arith.constant 0 : i32
    %c0_i32_0 = arith.constant 0 : i32
    return %arg0, %c0_i32 : i32, i32
  }
}

module attributes {stable_mosaic.version = 11 : i64} {
  func.func @_attn_kernel(%arg0: i32, %arg1: memref<1x8x32xf32, #tpu.memory_space<vmem>>, %arg2: memref<1x32xf32, #tpu.memory_space<vmem>>, %arg3: memref<1x32xf32, #tpu.memory_space<vmem>>, %arg4: memref<32x96xf32, #tpu.memory_space<vmem>>, %arg5: memref<32x32xf32, #tpu.memory_space<vmem>>, %arg6: memref<1x32xf32, #tpu.memory_space<vmem>>, %arg7: memref<1x8x32xf32, #tpu.memory_space<vmem>>) attributes {dimension_semantics = [#tpu.dimension_semantics<parallel>], iteration_bounds = array<i64: 2>, scalar_prefetch = 0 : i64, scratch_operands = 0 : i64, tpu.core_type = #tpu.core_type<tc>, window_params = [{transform_indices = @transform_0, window_bounds = array<i64: 1, 8, 32>}, {pipeline_mode = #tpu.pipeline_mode<synchronous>, transform_indices = @transform_1, window_bounds = array<i64: 1, 32>}, {pipeline_mode = #tpu.pipeline_mode<synchronous>, transform_indices = @transform_2, window_bounds = array<i64: 1, 32>}, {pipeline_mode = #tpu.pipeline_mode<synchronous>, transform_indices = @transform_3, window_bounds = array<i64: 32, 96>}, {pipeline_mode = #tpu.pipeline_mode<synchronous>, transform_indices = @transform_4, window_bounds = array<i64: 32, 32>}, {pipeline_mode = #tpu.pipeline_mode<synchronous>, transform_indices = @transform_5, window_bounds = array<i64: 1, 32>}, {transform_indices = @transform_6, window_bounds = array<i64: 1, 8, 32>}]} {
    %c0 = arith.constant 0 : index
    %c0_0 = arith.constant 0 : index
    %c0_1 = arith.constant 0 : index
    %0 = vector.load %arg1[%c0, %c0_0, %c0_1] : memref<1x8x32xf32, #tpu.memory_space<vmem>>, vector<1x8x32xf32>
    %1 = vector.shape_cast %0 : vector<1x8x32xf32> to vector<8x32xf32>
    %c0_2 = arith.constant 0 : index
    %c0_3 = arith.constant 0 : index
    %2 = vector.load %arg2[%c0_2, %c0_3] : memref<1x32xf32, #tpu.memory_space<vmem>>, vector<1x32xf32>
    %c0_4 = arith.constant 0 : index
    %c0_5 = arith.constant 0 : index
    %3 = vector.load %arg3[%c0_4, %c0_5] : memref<1x32xf32, #tpu.memory_space<vmem>>, vector<1x32xf32>
    %cst = arith.constant dense<0.000000e+00> : vector<8xf32>
    %4 = vector.multi_reduction <add>, %1, %cst [1] : vector<8x32xf32> to vector<8xf32>
    %5 = vector.shape_cast %4 : vector<8xf32> to vector<8x1xf32>
    %cst_6 = arith.constant 3.200000e+01 : f32
    %6 = vector.broadcast %cst_6 : f32 to vector<8x1xf32>
    %7 = arith.divf %5, %6 : vector<8x1xf32>
    %8 = vector.broadcast %7 : vector<8x1xf32> to vector<8x32xf32>
    %9 = arith.subf %1, %8 : vector<8x32xf32>
    %10 = arith.mulf %9, %9 : vector<8x32xf32>
    %cst_7 = arith.constant dense<0.000000e+00> : vector<8xf32>
    %11 = vector.multi_reduction <add>, %10, %cst_7 [1] : vector<8x32xf32> to vector<8xf32>
    %12 = vector.shape_cast %11 : vector<8xf32> to vector<8x1xf32>
    %cst_8 = arith.constant 3.200000e+01 : f32
    %13 = vector.broadcast %cst_8 : f32 to vector<8x1xf32>
    %14 = arith.divf %12, %13 : vector<8x1xf32>
    %cst_9 = arith.constant 9.99999974E-6 : f32
    %15 = vector.broadcast %cst_9 : f32 to vector<8x1xf32>
    %16 = arith.addf %14, %15 : vector<8x1xf32>
    %17 = math.rsqrt %16 : vector<8x1xf32>
    %18 = vector.broadcast %17 : vector<8x1xf32> to vector<8x32xf32>
    %19 = arith.mulf %9, %18 : vector<8x32xf32>
    %20 = vector.broadcast %2 : vector<1x32xf32> to vector<8x32xf32>
    %21 = arith.mulf %19, %20 : vector<8x32xf32>
    %22 = vector.broadcast %3 : vector<1x32xf32> to vector<8x32xf32>
    %23 = arith.addf %21, %22 : vector<8x32xf32>
    %c0_10 = arith.constant 0 : index
    %c0_11 = arith.constant 0 : index
    %24 = vector.load %arg4[%c0_10, %c0_11] : memref<32x96xf32, #tpu.memory_space<vmem>>, vector<32x96xf32>
    %cst_12 = arith.constant dense<0.000000e+00> : vector<8x96xf32>
    %25 = tpu.matmul %23, %24, %cst_12 {dimension_numbers = #tpu.dot_dimension_numbers<[1], [0], [0], [1], [0, 0, 1, 1], [], []>} : vector<8x32xf32>, vector<32x96xf32>, vector<8x96xf32> -> vector<8x96xf32>
    %26 = tpu.iota {dimensions = array<i32: 0>} : vector<8x8xi32>
    %27 = tpu.iota {dimensions = array<i32: 1>} : vector<8x8xi32>
    %28 = arith.cmpi sge, %26, %27 : vector<8x8xi32>
    %29 = vector.extract_strided_slice %25 {offsets = [0, 0], sizes = [8, 8], strides = [1, 1]} : vector<8x96xf32> to vector<8x8xf32>
    %30 = vector.extract_strided_slice %25 {offsets = [0, 32], sizes = [8, 8], strides = [1, 1]} : vector<8x96xf32> to vector<8x8xf32>
    %31 = vector.extract_strided_slice %25 {offsets = [0, 64], sizes = [8, 8], strides = [1, 1]} : vector<8x96xf32> to vector<8x8xf32>
    %cst_13 = arith.constant dense<0.000000e+00> : vector<8x8xf32>
    %32 = tpu.matmul %29, %30, %cst_13 {dimension_numbers = #tpu.dot_dimension_numbers<[1], [1], [0], [0], [0, 0, 1, 0], [], []>} : vector<8x8xf32>, vector<8x8xf32>, vector<8x8xf32> -> vector<8x8xf32>
    %cst_14 = arith.constant 0.353553385 : f32
    %33 = vector.broadcast %cst_14 : f32 to vector<8x8xf32>
    %34 = arith.mulf %32, %33 : vector<8x8xf32>
    %cst_15 = arith.constant 0xFF800000 : f32
    %35 = vector.broadcast %cst_15 : f32 to vector<8x8xf32>
    %36 = arith.select %28, %34, %35 : vector<8x8xi1>, vector<8x8xf32>
    %cst_16 = arith.constant dense<0xFF800000> : vector<8xf32>
    %37 = vector.multi_reduction <maximumf>, %36, %cst_16 [1] : vector<8x8xf32> to vector<8xf32>
    %38 = vector.shape_cast %37 : vector<8xf32> to vector<8x1xf32>
    %39 = vector.broadcast %38 : vector<8x1xf32> to vector<8x8xf32>
    %40 = arith.subf %36, %39 : vector<8x8xf32>
    %41 = math.exp %40 : vector<8x8xf32>
    %cst_17 = arith.constant dense<0.000000e+00> : vector<8xf32>
    %42 = vector.multi_reduction <add>, %41, %cst_17 [1] : vector<8x8xf32> to vector<8xf32>
    %43 = vector.shape_cast %42 : vector<8xf32> to vector<8x1xf32>
    %cst_18 = arith.constant dense<0.000000e+00> : vector<8x8xf32>
    %44 = tpu.matmul %41, %31, %cst_18 {dimension_numbers = #tpu.dot_dimension_numbers<[1], [0], [0], [1], [0, 0, 1, 1], [], []>} : vector<8x8xf32>, vector<8x8xf32>, vector<8x8xf32> -> vector<8x8xf32>
    %45 = tpu.reciprocal %43 : vector<8x1xf32> -> vector<8x1xf32>
    %46 = vector.broadcast %45 : vector<8x1xf32> to vector<8x8xf32>
    %47 = arith.mulf %44, %46 : vector<8x8xf32>
    %48 = vector.extract_strided_slice %25 {offsets = [0, 8], sizes = [8, 8], strides = [1, 1]} : vector<8x96xf32> to vector<8x8xf32>
    %49 = vector.extract_strided_slice %25 {offsets = [0, 40], sizes = [8, 8], strides = [1, 1]} : vector<8x96xf32> to vector<8x8xf32>
    %50 = vector.extract_strided_slice %25 {offsets = [0, 72], sizes = [8, 8], strides = [1, 1]} : vector<8x96xf32> to vector<8x8xf32>
    %cst_19 = arith.constant dense<0.000000e+00> : vector<8x8xf32>
    %51 = tpu.matmul %48, %49, %cst_19 {dimension_numbers = #tpu.dot_dimension_numbers<[1], [1], [0], [0], [0, 0, 1, 0], [], []>} : vector<8x8xf32>, vector<8x8xf32>, vector<8x8xf32> -> vector<8x8xf32>
    %cst_20 = arith.constant 0.353553385 : f32
    %52 = vector.broadcast %cst_20 : f32 to vector<8x8xf32>
    %53 = arith.mulf %51, %52 : vector<8x8xf32>
    %cst_21 = arith.constant 0xFF800000 : f32
    %54 = vector.broadcast %cst_21 : f32 to vector<8x8xf32>
    %55 = arith.select %28, %53, %54 : vector<8x8xi1>, vector<8x8xf32>
    %cst_22 = arith.constant dense<0xFF800000> : vector<8xf32>
    %56 = vector.multi_reduction <maximumf>, %55, %cst_22 [1] : vector<8x8xf32> to vector<8xf32>
    %57 = vector.shape_cast %56 : vector<8xf32> to vector<8x1xf32>
    %58 = vector.broadcast %57 : vector<8x1xf32> to vector<8x8xf32>
    %59 = arith.subf %55, %58 : vector<8x8xf32>
    %60 = math.exp %59 : vector<8x8xf32>
    %cst_23 = arith.constant dense<0.000000e+00> : vector<8xf32>
    %61 = vector.multi_reduction <add>, %60, %cst_23 [1] : vector<8x8xf32> to vector<8xf32>
    %62 = vector.shape_cast %61 : vector<8xf32> to vector<8x1xf32>
    %cst_24 = arith.constant dense<0.000000e+00> : vector<8x8xf32>
    %63 = tpu.matmul %60, %50, %cst_24 {dimension_numbers = #tpu.dot_dimension_numbers<[1], [0], [0], [1], [0, 0, 1, 1], [], []>} : vector<8x8xf32>, vector<8x8xf32>, vector<8x8xf32> -> vector<8x8xf32>
    %64 = tpu.reciprocal %62 : vector<8x1xf32> -> vector<8x1xf32>
    %65 = vector.broadcast %64 : vector<8x1xf32> to vector<8x8xf32>
    %66 = arith.mulf %63, %65 : vector<8x8xf32>
    %67 = vector.extract_strided_slice %25 {offsets = [0, 16], sizes = [8, 8], strides = [1, 1]} : vector<8x96xf32> to vector<8x8xf32>
    %68 = vector.extract_strided_slice %25 {offsets = [0, 48], sizes = [8, 8], strides = [1, 1]} : vector<8x96xf32> to vector<8x8xf32>
    %69 = vector.extract_strided_slice %25 {offsets = [0, 80], sizes = [8, 8], strides = [1, 1]} : vector<8x96xf32> to vector<8x8xf32>
    %cst_25 = arith.constant dense<0.000000e+00> : vector<8x8xf32>
    %70 = tpu.matmul %67, %68, %cst_25 {dimension_numbers = #tpu.dot_dimension_numbers<[1], [1], [0], [0], [0, 0, 1, 0], [], []>} : vector<8x8xf32>, vector<8x8xf32>, vector<8x8xf32> -> vector<8x8xf32>
    %cst_26 = arith.constant 0.353553385 : f32
    %71 = vector.broadcast %cst_26 : f32 to vector<8x8xf32>
    %72 = arith.mulf %70, %71 : vector<8x8xf32>
    %cst_27 = arith.constant 0xFF800000 : f32
    %73 = vector.broadcast %cst_27 : f32 to vector<8x8xf32>
    %74 = arith.select %28, %72, %73 : vector<8x8xi1>, vector<8x8xf32>
    %cst_28 = arith.constant dense<0xFF800000> : vector<8xf32>
    %75 = vector.multi_reduction <maximumf>, %74, %cst_28 [1] : vector<8x8xf32> to vector<8xf32>
    %76 = vector.shape_cast %75 : vector<8xf32> to vector<8x1xf32>
    %77 = vector.broadcast %76 : vector<8x1xf32> to vector<8x8xf32>
    %78 = arith.subf %74, %77 : vector<8x8xf32>
    %79 = math.exp %78 : vector<8x8xf32>
    %cst_29 = arith.constant dense<0.000000e+00> : vector<8xf32>
    %80 = vector.multi_reduction <add>, %79, %cst_29 [1] : vector<8x8xf32> to vector<8xf32>
    %81 = vector.shape_cast %80 : vector<8xf32> to vector<8x1xf32>
    %cst_30 = arith.constant dense<0.000000e+00> : vector<8x8xf32>
    %82 = tpu.matmul %79, %69, %cst_30 {dimension_numbers = #tpu.dot_dimension_numbers<[1], [0], [0], [1], [0, 0, 1, 1], [], []>} : vector<8x8xf32>, vector<8x8xf32>, vector<8x8xf32> -> vector<8x8xf32>
    %83 = tpu.reciprocal %81 : vector<8x1xf32> -> vector<8x1xf32>
    %84 = vector.broadcast %83 : vector<8x1xf32> to vector<8x8xf32>
    %85 = arith.mulf %82, %84 : vector<8x8xf32>
    %86 = vector.extract_strided_slice %25 {offsets = [0, 24], sizes = [8, 8], strides = [1, 1]} : vector<8x96xf32> to vector<8x8xf32>
    %87 = vector.extract_strided_slice %25 {offsets = [0, 56], sizes = [8, 8], strides = [1, 1]} : vector<8x96xf32> to vector<8x8xf32>
    %88 = vector.extract_strided_slice %25 {offsets = [0, 88], sizes = [8, 8], strides = [1, 1]} : vector<8x96xf32> to vector<8x8xf32>
    %cst_31 = arith.constant dense<0.000000e+00> : vector<8x8xf32>
    %89 = tpu.matmul %86, %87, %cst_31 {dimension_numbers = #tpu.dot_dimension_numbers<[1], [1], [0], [0], [0, 0, 1, 0], [], []>} : vector<8x8xf32>, vector<8x8xf32>, vector<8x8xf32> -> vector<8x8xf32>
    %cst_32 = arith.constant 0.353553385 : f32
    %90 = vector.broadcast %cst_32 : f32 to vector<8x8xf32>
    %91 = arith.mulf %89, %90 : vector<8x8xf32>
    %cst_33 = arith.constant 0xFF800000 : f32
    %92 = vector.broadcast %cst_33 : f32 to vector<8x8xf32>
    %93 = arith.select %28, %91, %92 : vector<8x8xi1>, vector<8x8xf32>
    %cst_34 = arith.constant dense<0xFF800000> : vector<8xf32>
    %94 = vector.multi_reduction <maximumf>, %93, %cst_34 [1] : vector<8x8xf32> to vector<8xf32>
    %95 = vector.shape_cast %94 : vector<8xf32> to vector<8x1xf32>
    %96 = vector.broadcast %95 : vector<8x1xf32> to vector<8x8xf32>
    %97 = arith.subf %93, %96 : vector<8x8xf32>
    %98 = math.exp %97 : vector<8x8xf32>
    %cst_35 = arith.constant dense<0.000000e+00> : vector<8xf32>
    %99 = vector.multi_reduction <add>, %98, %cst_35 [1] : vector<8x8xf32> to vector<8xf32>
    %100 = vector.shape_cast %99 : vector<8xf32> to vector<8x1xf32>
    %cst_36 = arith.constant dense<0.000000e+00> : vector<8x8xf32>
    %101 = tpu.matmul %98, %88, %cst_36 {dimension_numbers = #tpu.dot_dimension_numbers<[1], [0], [0], [1], [0, 0, 1, 1], [], []>} : vector<8x8xf32>, vector<8x8xf32>, vector<8x8xf32> -> vector<8x8xf32>
    %102 = tpu.reciprocal %100 : vector<8x1xf32> -> vector<8x1xf32>
    %103 = vector.broadcast %102 : vector<8x1xf32> to vector<8x8xf32>
    %104 = arith.mulf %101, %103 : vector<8x8xf32>
    %105 = tpu.concatenate %47, %66, %85, %104 in 1 : vector<8x8xf32>, vector<8x8xf32>, vector<8x8xf32>, vector<8x8xf32> -> vector<8x32xf32>
    %c0_37 = arith.constant 0 : index
    %c0_38 = arith.constant 0 : index
    %106 = vector.load %arg5[%c0_37, %c0_38] : memref<32x32xf32, #tpu.memory_space<vmem>>, vector<32x32xf32>
    %cst_39 = arith.constant dense<0.000000e+00> : vector<8x32xf32>
    %107 = tpu.matmul %105, %106, %cst_39 {dimension_numbers = #tpu.dot_dimension_numbers<[1], [0], [0], [1], [0, 0, 1, 1], [], []>} : vector<8x32xf32>, vector<32x32xf32>, vector<8x32xf32> -> vector<8x32xf32>
    %c0_40 = arith.constant 0 : index
    %c0_41 = arith.constant 0 : index
    %108 = vector.load %arg6[%c0_40, %c0_41] : memref<1x32xf32, #tpu.memory_space<vmem>>, vector<1x32xf32>
    %109 = vector.broadcast %108 : vector<1x32xf32> to vector<8x32xf32>
    %110 = arith.addf %107, %109 : vector<8x32xf32>
    %111 = arith.addf %1, %110 : vector<8x32xf32>
    %c0_42 = arith.constant 0 : index
    %c0_43 = arith.constant 0 : index
    %c0_44 = arith.constant 0 : index
    %112 = vector.load %arg7[%c0_42, %c0_43, %c0_44] : memref<1x8x32xf32, #tpu.memory_space<vmem>>, vector<1x8x32xf32>
    %113 = vector.shape_cast %112 : vector<1x8x32xf32> to vector<8x32xf32>
    %114 = vector.shape_cast %111 : vector<8x32xf32> to vector<1x8x32xf32>
    tpu.vector_store %arg7[%c0_42, %c0_43, %c0_44], %114 {strides = array<i32>} : memref<1x8x32xf32, #tpu.memory_space<vmem>>, vector<1x8x32xf32>,
    return
  }
  func.func @transform_0(%arg0: i32) -> (i32, i32, i32) {
    %c0_i32 = arith.constant 0 : i32
    %c0_i32_0 = arith.constant 0 : i32
    %c0_i32_1 = arith.constant 0 : i32
    return %arg0, %c0_i32, %c0_i32_0 : i32, i32, i32
  }
  func.func @transform_1(%arg0: i32) -> (i32, i32) {
    %c0_i32 = arith.constant 0 : i32
    %c0_i32_0 = arith.constant 0 : i32
    %c0_i32_1 = arith.constant 0 : i32
    return %c0_i32, %c0_i32_0 : i32, i32
  }
  func.func @transform_2(%arg0: i32) -> (i32, i32) {
    %c0_i32 = arith.constant 0 : i32
    %c0_i32_0 = arith.constant 0 : i32
    %c0_i32_1 = arith.constant 0 : i32
    return %c0_i32, %c0_i32_0 : i32, i32
  }
  func.func @transform_3(%arg0: i32) -> (i32, i32) {
    %c0_i32 = arith.constant 0 : i32
    %c0_i32_0 = arith.constant 0 : i32
    %c0_i32_1 = arith.constant 0 : i32
    return %c0_i32, %c0_i32_0 : i32, i32
  }
  func.func @transform_4(%arg0: i32) -> (i32, i32) {
    %c0_i32 = arith.constant 0 : i32
    %c0_i32_0 = arith.constant 0 : i32
    %c0_i32_1 = arith.constant 0 : i32
    return %c0_i32, %c0_i32_0 : i32, i32
  }
  func.func @transform_5(%arg0: i32) -> (i32, i32) {
    %c0_i32 = arith.constant 0 : i32
    %c0_i32_0 = arith.constant 0 : i32
    %c0_i32_1 = arith.constant 0 : i32
    return %c0_i32, %c0_i32_0 : i32, i32
  }
  func.func @transform_6(%arg0: i32) -> (i32, i32, i32) {
    %c0_i32 = arith.constant 0 : i32
    %c0_i32_0 = arith.constant 0 : i32
    %c0_i32_1 = arith.constant 0 : i32
    return %arg0, %c0_i32, %c0_i32_0 : i32, i32, i32
  }
}

</mosaic_0001>

<bundles_post_ra>
// kernel: transformer_block.3
= control target key start
LH: loop header
LB: loop body
LE: loop exit
PB: predicated region body
PF: predicated region fallthrough
CT: control target
= control target key end

     0   :  { %vm35_vm0 = vcmask 261120   ;;  %s629_s0 = inlined_call_operand.vmem [shape: f32[16,32], index: 0, kind: input, shape index: {}]   ;;  %s630_s1 = inlined_call_operand.vmem [shape: f32[1,32], index: 1, kind: input, shape index: {}]   ;;  %s631_s2 = inlined_call_operand.vmem [shape: f32[1,32], index: 2, kind: input, shape index: {}]   ;;  %s632_s3 = inlined_call_operand.vmem [shape: f32[32,128], index: 3, kind: input, shape index: {}]   ;;  %s633_s4 = inlined_call_operand.vmem [shape: f32[1,128], index: 4, kind: input, shape index: {}]   ;;  %s634_s5 = inlined_call_operand.vmem [shape: f32[128,32], index: 5, kind: input, shape index: {}]   ;;  %s635_s6 = inlined_call_operand.vmem [shape: f32[1,32], index: 6, kind: input, shape index: {}]   ;;  %s636_s7 = inlined_call_operand.hbm [shape: f32[16,32], index: 7, kind: output, shape index: {}]  }
   0x1   :  { %v508_v0 = vld [vmem:[%s629_s0] sm:$0xff]  ;;  %v513_v1 = vld [vmem:[%s629_s0 + $0x8] sm:$0xff] }
   0x2   :  { %12 = vsyncpa [#allocation5], 0  ;;  %v36_v2 = vsel %vm35_vm0, %v508_v0, 0.0  ;;  %v39_v3 = vsel %vm35_vm0, %v513_v1, 0.0  ;;  %v85_v14 = vld [vmem:[%s632_s3] sm:$0xff]  ;;  %v86_v15 = vld [vmem:[%s632_s3 + $0x8] sm:$0xff] }
   0x3   :  { %37 = vadd.xlane.f32.xlu0 %v36_v2  ;;  %v389_v16 = vpack.c.bf16 %v86_v15, %v85_v14  ;;  %v87_v17 = vld [vmem:[%s632_s3 + $0x10] sm:$0xff]  ;;  %v88_v18 = vld [vmem:[%s632_s3 + $0x18] sm:$0xff]  ;;  %v182_v20 = vld [vmem:[%s634_s5] sm:$0xff]  ;;  %v461_v62 = vmov 0.0   ;;  %s462_s22 = smov [#allocation4]  }
   0x4   :  { %v393_v19 = vpack.c.bf16 %v88_v18, %v87_v17  ;;  %v183_v21 = vld [vmem:[%s634_s5 + $0x8] sm:$0xff]  ;;  %v184_v22 = vld [vmem:[%s634_s5 + $0x10] sm:$0xff]  ;;  %v185_v24 = vld [vmem:[%s634_s5 + $0x18] sm:$0xff]  ;;  %82 = vst.msk [vmem:[#allocation3 + $0x8] sm:$0xff] %vm35_vm0, %v461_v62  ;;  %s302_s23 = sshll.u32 %s462_s22, 4  ;;  %s303_s23 = int_to_ptr.vmem [resolvable:$true] %s302_s23 }
   0x5   :  { %390 = vmatprep.subr.bf16.mxu0 %v389_v16  ;;  %v397_v23 = vpack.c.bf16 %v183_v21, %v182_v20  ;;  %v401_v25 = vpack.c.bf16 %v185_v24, %v184_v22  ;;  %v186_v26 = vld [vmem:[%s634_s5 + $0x20] sm:$0xff]  ;;  %v187_v27 = vld [vmem:[%s634_s5 + $0x28] sm:$0xff]  ;;  %v188_v29 = vld [vmem:[%s634_s5 + $0x30] sm:$0xff]  ;;  %81 = vst.msk [vmem:[#allocation3] sm:$0xff] %vm35_vm0, %v461_v62  ;;  %s437_s24 = scalar_lea.vmem %s303_s23, 256  ;;  %p442_p1 = scmp.lt.s32.totalorder %s303_s23, %s303_s23 }
   0x6   :  { %392 = vmatpush3.bf16.msra.mxu0 %v389_v16  ;;  %v405_v28 = vpack.c.bf16 %v187_v27, %v186_v26  ;;  %v189_v30 = vld [vmem:[%s634_s5 + $0x38] sm:$0xff]  ;;  %v190_v32 = vld [vmem:[%s634_s5 + $0x40] sm:$0xff]  ;;  %v191_v33 = vld [vmem:[%s634_s5 + $0x48] sm:$0xff]  ;;  %p438_p0 = scmp.ne.s32.totalorder %s303_s23, %s437_s24  ;;  %p443_p2 = scmp.lt.s32.totalorder %s437_s24, %s437_s24 }
   0x7   :  { %40 = vadd.xlane.f32.xlu0 %v39_v3  ;;  %394 = vmatprep.subr.bf16.mxu0 %v393_v19  ;;  %v409_v31 = vpack.c.bf16 %v189_v30, %v188_v29  ;;  %v413_v34 = vpack.c.bf16 %v191_v33, %v190_v32  ;;  %v192_v35 = vld [vmem:[%s634_s5 + $0x50] sm:$0xff]  ;;  %v193_v36 = vld [vmem:[%s634_s5 + $0x58] sm:$0xff]  ;;  %v194_v38 = vld [vmem:[%s634_s5 + $0x60] sm:$0xff] }
   0x8   :  { %398 = vmatprep.subr.bf16.mxu1 %v397_v23  ;;  %v417_v37 = vpack.c.bf16 %v193_v36, %v192_v35  ;;  %v195_v39 = vld [vmem:[%s634_s5 + $0x68] sm:$0xff]  ;;  %v313_v48 = vld [vmem:[%s630_s1] ss:$0 sm:$0xff]  ;;  %v196_v59 = vld [vmem:[%s634_s5 + $0x70] sm:$0xff]  ;;  %p444_p3 = por %p443_p2, %p442_p1 }
   0x9   :  { %400 = vmatpush3.bf16.msra.mxu1 %v397_v23  ;;  %v421_v40 = vpack.c.bf16 %v195_v39, %v194_v38  ;;  %v314_v50 = vld [vmem:[%s631_s2] ss:$0 sm:$0xff]  ;;  %v197_v60 = vld [vmem:[%s634_s5 + $0x78] sm:$0xff] }
   0xa   :  { %396 = vmatpush3.bf16.msra.mxu0 %v393_v19  ;;  %402 = vmatprep.subr.bf16.mxu1 %v401_v25  ;;  %v425_v61 = vpack.c.bf16 %v197_v60, %v196_v59  ;;  %v315_v63 = vld [vmem:[%s633_s4] ss:$0 sm:$0xff]  ;;  %p445_p4 = pnand %p444_p3, %p438_p0 }
   0xb   :  { %v318_v14 = vld [vmem:[%s635_s6] ss:$0 sm:$0xff] }
   0xd   :  { %404 = vmatpush3.bf16.msra.mxu1 %v401_v25 }
   0xe   :  { %406 = vmatprep.subr.bf16.mxu1 %v405_v28 }
  0x11   :  { %408 = vmatpush3.bf16.msra.mxu1 %v405_v28 }
  0x12   :  { %410 = vmatprep.subr.bf16.mxu1 %v409_v31 }
  0x15   :  { %412 = vmatpush3.bf16.msra.mxu1 %v409_v31 }
  0x16   :  { %414 = vmatprep.subr.bf16.mxu1 %v413_v34 }
  0x19   :  { %416 = vmatpush3.bf16.msra.mxu1 %v413_v34 }
  0x1a   :  { %418 = vmatprep.subr.bf16.mxu1 %v417_v37 }
  0x1d   :  { %420 = vmatpush3.bf16.msra.mxu1 %v417_v37 }
  0x1e   :  { %422 = vmatprep.subr.bf16.mxu1 %v421_v40 }
  0x21   :  { %424 = vmatpush3.bf16.msra.mxu1 %v421_v40 }
  0x22   :  { %426 = vmatprep.subr.bf16.mxu1 %v425_v61 }
  0x25   :  { %428 = vmatpush3.bf16.msra.mxu1 %v425_v61 }
  0x90   :  { %v38_v4 = vpop.xlane.xlu0 %37 }
  0x91   :  { %v43_v5 = vmul.f32 0.03125, %v38_v4 }
  0x93   :  { %v520_v6 = vsub.f32 %v508_v0, %v43_v5 }
  0x94   :  { %v41_v7 = vpop.xlane.xlu0 %40 }
  0x95   :  { %v44_v8 = vmul.f32 0.03125, %v41_v7  ;;  %v47_v9 = vmul.f32 %v520_v6, %v520_v6 }
  0x97   :  { %v525_v10 = vsub.f32 %v513_v1, %v44_v8  ;;  %v49_v11 = vsel %vm35_vm0, %v47_v9, 0.0  ;;  %v181_v8 = vld [vmem:[#allocation3 + $0x8] sm:$0xff]  ;;  %v180_v9 = vld [vmem:[#allocation3] sm:$0xff] }
  0x98   :  { %50 = vadd.xlane.f32.xlu1 %v49_v11 }
  0x99   :  { %v48_v12 = vmul.f32 %v525_v10, %v525_v10 }
  0x9b   :  { %v52_v13 = vsel %vm35_vm0, %v48_v12, 0.0 }
  0x9c   :  { %53 = vadd.xlane.f32.xlu1 %v52_v13 }
 0x125   :  { %v51_v41 = vpop.xlane.xlu1 %50 }
 0x126   :  { %v55_v42 = vmul.f32 0.03125, %v51_v41 }
 0x128   :  { %v57_v43 = vadd.f32 1e-05, %v55_v42 }
 0x129   :  { %v54_v44 = vpop.xlane.xlu1 %53 }
 0x12a   :  { %433 = vrsqrt.f32 %v57_v43  ;;  %v56_v45 = vmul.f32 0.03125, %v54_v44 }
 0x12c   :  { %v58_v46 = vadd.f32 1e-05, %v56_v45 }
 0x12e   :  { %435 = vrsqrt.f32 %v58_v46 }
 0x134   :  { %v434_v47 = vpop.eup %433 }
 0x135   :  { %v61_v49 = vmul.f32 %v434_v47, %v520_v6 }
 0x137   :  { %v69_v51 = vmul.f32 %v313_v48, %v61_v49 }
 0x138   :  { %v436_v52 = vpop.eup %435 }
 0x139   :  { %v77_v53 = vadd.f32 %v314_v50, %v69_v51  ;;  %v62_v54 = vmul.f32 %v436_v52, %v525_v10 }
 0x13b   :  { %79 = vst.msk [vmem:[#allocation2] sm:$0xff] %vm35_vm0, %v77_v53  ;;  %v70_v55 = vmul.f32 %v313_v48, %v62_v54 }
 0x13d   :  { %v78_v56 = vadd.f32 %v314_v50, %v70_v55 }
 0x13f   :  { %80 = vst.msk [vmem:[#allocation2 + $0x8] sm:$0xff] %vm35_vm0, %v78_v56 }
 0x142   :  { %v83_v57 = vld [vmem:[#allocation2] sm:$0xff] }
 0x143   :  { %351 = vmatprep.mubr.msk.f32.mxu0 %vm35_vm0, %v83_v57 }
 0x146   :  { %v84_v58 = vld [vmem:[#allocation2 + $0x8] sm:$0xff] }
 0x147   :  { %352 = vmatmul.mubr.msk.f32.vlgmr.msra.gmra.mrb[0].mxu0 %vm35_vm0, %v84_v58 }
 0x21a   :  { %v353_v2 = vpop.f32.mrb[0].mxu0 }
 0x21b   :  { %v175_v3 = vadd.f32 %v353_v2, %v315_v63  ;;  %v169_v4 = vpop.f32.mrb[1].mxu0 }
 0x21c   :  { %v170_v5 = vadd.f32 %v315_v63, %v169_v4 }
 0x21d   :  { %v179_v7 = vmax.f32 %v175_v3, 0.0 }
 0x21e   :  { %v178_v6 = vmax.f32 %v170_v5, 0.0 }
 0x220   :  { %386 = vmatprep.mubr.f32.mxu1 %v178_v6 }
 0x221   :  { %387 = vmatmul.mubr.f32.vlgmr.msra.gmra.mrb[0].mxu1 %v179_v7 }
 0x2f4   :  { %v388_v10 = vpop.f32.mrb[0].mxu1 }
 0x2f5   :  { %v274_v11 = vadd.f32 %v388_v10, %v181_v8  ;;  %v264_v12 = vpop.f32.mrb[1].mxu1 }
 0x2f6   :  { %v273_v13 = vadd.f32 %v264_v12, %v180_v9 }
 0x2f7   :  { %276 = vst.msk [vmem:[#allocation3 + $0x8] sm:$0xff] %vm35_vm0, %v274_v11 }
 0x2f8   :  { %275 = vst.msk [vmem:[#allocation3] sm:$0xff] %vm35_vm0, %v273_v13 }
 0x2fe   :  { %v281_v15 = vld [vmem:[#allocation3 + $0x8] sm:$0xff] }
 0x2ff   :  { %v280_v16 = vld [vmem:[#allocation3] sm:$0xff]  ;;  %v290_v17 = vadd.f32 %v318_v14, %v281_v15 }
 0x300   :  { %v289_v18 = vadd.f32 %v318_v14, %v280_v16 }
 0x301   :  { %v294_v19 = vadd.f32 %v290_v17, %v513_v1 }
 0x302   :  { %v293_v20 = vadd.f32 %v289_v18, %v508_v0 }
 0x303   :  { %296 = vst.msk [vmem:[#allocation4 + $0x8] sm:$0xff] %vm35_vm0, %v294_v19 }
 0x304   :  { %295 = vst.msk [vmem:[#allocation4] sm:$0xff] %vm35_vm0, %v293_v20 }
 0x305   :  { %448 = shalt.err (!%p445_p4)
}
 0x306   :  { %s449_s26 = scalar_lea.hbm %s636_s7, 256 }
 0x307   :  { %p450_p5 = scmp.ne.s32.totalorder %s636_s7, %s449_s26  ;;  %p453_p6 = scmp.lt.u32.totalorder %s449_s26, %s636_s7 }
 0x309   :  { %p455_p7 = pnand %p453_p6, %p450_p5 }
 0x30b   :  { %458 = shalt.err (!%p455_p7)
}
 0x30c   :  { %s463_s30 = smov 128   ;;  %s464_s8 = smov 8  }
 0x30d   :  { %308 = dma.vmem_to_hbm [thread:$0]  %s303_s23, 256, %s636_s7, [#allocation5], %s463_s30, %s463_s30, %s464_s8  }
 0x30e   :  { %459 = dma.done.wait [#allocation5], 256  }
 0x30f   :  { %460 = vsyncadd [#allocation5], 4294967040 }
 0x310   :  { %312 = vsyncpa [#allocation5], 1 }

// kernel: transformer_block.2
= control target key start
LH: loop header
LB: loop body
LE: loop exit
PB: predicated region body
PF: predicated region fallthrough
CT: control target
= control target key end

     0   :  { %11 = vsyncpa [#allocation3], 0  ;;  %s1856_s0 = inlined_call_operand.hbm [shape: f32[2,8,32], index: 0, kind: input, shape index: {}]   ;;  %s1857_s1 = inlined_call_operand.vmem [shape: f32[1,32], index: 1, kind: input, shape index: {}]   ;;  %s1858_s2 = inlined_call_operand.vmem [shape: f32[1,32], index: 2, kind: input, shape index: {}]   ;;  %s1859_s3 = inlined_call_operand.vmem [shape: f32[32,96], index: 3, kind: input, shape index: {}]   ;;  %s1860_s4 = inlined_call_operand.hbm [shape: f32[32,32], index: 4, kind: input, shape index: {}]   ;;  %s1861_s5 = inlined_call_operand.vmem [shape: f32[1,32], index: 5, kind: input, shape index: {}]   ;;  %s1862_s6 = inlined_call_operand.vmem [shape: f32[2,8,32], index: 6, kind: output, shape index: {}]  }
   0x1   :  { %13 = vsyncpa [#allocation3 + $0x1], 0 }
   0x2   :  { %14 = vsyncpa [#allocation5], 0  ;;  %s1612_s21 = smov 0   ;;  %s1614_s22 = smov 0  }
   0x3   :  { %s1616_s23 = smov 0   ;;  %s1618_s24 = smov 0  }
   0x4 LB: > { %s1631_s25 = sadd.s32 4294967295, %s1554_s24   ;;  %p40_p0 = scmp.ne.s32.totalorder %s1546_s22, %s1542_s21  ;;  %s1554_s24 = sphi %s1618_s24, %s1877_s24   ;;  %s1550_s23 = sphi %s1616_s23, %s1876_s23   ;;  %s1546_s22 = sphi %s1614_s22, %s1875_s22   ;;  %s1542_s21 = sphi %s1612_s21, %s1874_s21  }
   0x5   : > { %p1863_p1 = scmp.eq.s32.totalorder %s1631_s25, 0  ;;  %p1243_p2 = scmp.ge.s32.totalorder %s1554_s24, 1 }
   0x6   : > { %p182_p3 = scmp.lt.s32.totalorder %s1554_s24, 3  ;;  %s1556_s28 = smov [#allocation4]  }
   0x7   : > { %p1639_p4 = por %p1863_p1, %p40_p0  ;;  %s203_s29 = sshll.u32 %s1556_s28, 4  ;;  %s204_s29 = int_to_ptr.vmem [resolvable:$true] %s203_s29 }
   0x8   : > { %p1643_p5 = pnand %p1243_p2, %p182_p3  ;;  %s1656_s7 = sadd.s32 1, %s1554_s24  }
   0x9   : > { %s1866_s26 = scalar_select %p1639_p4, 1, 0 }
   0xa   : > { %s1867_s27 = scalar_select %p1643_p5, 1, 0 }
   0xb   : > { %p1377_p6 = pneg %p1643_p5  ;;  %s27_s8 = sadd.s32 1, %s1550_s23 }
   0xc   : > { %s24_s9 = ssub.s32 %s1554_s24, %s1656_s7  ;;  %s1458_s12 = scalar_lea.hbm %s1860_s4, 512 }
   0xd   : > { %p1651_p7 = pnand %p1377_p6, %p1863_p1  ;;  %p1459_p8 = scmp.ne.s32.totalorder %s1860_s4, %s1458_s12 }
   0xe   : > { %p1465_p12 = scmp.lt.u32.totalorder %s1458_s12, %s1860_s4 }
   0xf   : > { %p1460_p9 = pneg %p1651_p7 }
  0x11   : > { %p1461_p10 = pnand %p1460_p9, %p1459_p8 }
  0x13   : > { %p1462_p11 = pneg %p1461_p10 }
  0x15   : > { %p1467_p13 = pnand %p1465_p12, %p1462_p11 }
  0x17   : > { %1470 = shalt.err (!%p1467_p13)
}
  0x18   : > { %s1471_s17 = scalar_lea.vmem %s204_s29, 512  ;;  %p1479_p6 = scmp.lt.s32.totalorder %s204_s29, %s204_s29 }
  0x19   : > { %p1472_p0 = scmp.ne.s32.totalorder %s204_s29, %s1471_s17  ;;  %p1480_p1 = scmp.lt.s32.totalorder %s1471_s17, %s1471_s17 }
  0x1b   : > { %p1474_p2 = pnand %p1472_p0, %p1460_p9  ;;  %p1481_p4 = por %p1480_p1, %p1479_p6 }
  0x1d   : > { %p1475_p3 = pneg %p1474_p2 }
  0x1f   : > { %p1482_p5 = pnand %p1481_p4, %p1475_p3 }
  0x21   : > { %1485 = shalt.err (!%p1482_p5)
}
  0x22   : > { %s1557_s18 = smov 128   ;;  %s1558_s19 = smov 8  }
  0x23   : > { %1380 = dma.hbm_to_vmem [thread:$0]  (!%p1651_p7), %s1860_s4, 512, %s204_s29, [#allocation5], %s1557_s18, %s1557_s18, %s1558_s19  }
  0x24   : > { %p25_p8 = scmp.eq.s32.totalorder %s24_s9, 0  ;;  %p34_p9 = scmp.ne.s32.totalorder %s1550_s23, %s1546_s22 }
  0x25   : > { %p35_p1 = scmp.eq.s32.totalorder %s1554_s24, 0  ;;  %p1386_p4 = scmp.lt.s32.totalorder %s1554_s24, 2 }
  0x26   : > { %s1682_s28 = scalar_select %p25_p8, %s1550_s23, %s27_s8  }
  0x27   : > { %p36_p5 = por %p35_p1, %p34_p9  ;;  %s220_s10 = sand.u32 1, %s1550_s23  }
  0x28   : > { %s1246_s11 = sshll.u32 %s220_s10, 3  ;;  %s1247_s12 = sshll.u32 %s1554_s24, 7 }
  0x29   : > { %s1689_s15 = scalar_lea.hbm %s1856_s0, %s1247_s12  ;;  %s224_s29 = scalar_lea.vmem [#allocation2], %s1246_s11 }
  0x2a   : > { %s231_s30 = sshll.u32 %s224_s29, 4  ;;  %p1693_p7 = pnand %p1386_p4, %p36_p5  ;;  %s1691_s30 = int_to_ptr.vmem [resolvable:$true] %s231_s30 }
  0x2b   : > { %s221_s24 = scalar_lea.sflag [#allocation3], %s220_s10  ;;  %s1486_s9 = scalar_lea.hbm %s1689_s15, 128 }
  0x2c   : > { %p1487_p10 = scmp.ne.s32.totalorder %s1689_s15, %s1486_s9  ;;  %p1488_p11 = pneg %p1693_p7 }
  0x2d   : > { %s1491_s18 = scalar_lea.hbm %s1856_s0, 256  ;;  %p1492_p0 = scmp.lt.u32.totalorder %s1689_s15, %s1856_s0 }
  0x2e   : > { %p1489_p12 = pnand %p1488_p11, %p1487_p10  ;;  %p1493_p2 = scmp.lt.u32.totalorder %s1491_s18, %s1486_s9 }
  0x2f   : > { %p1495_p6 = scmp.lt.u32.totalorder %s1486_s9, %s1689_s15 }
  0x30   : > { %p1490_p13 = pneg %p1489_p12  ;;  %p1494_p3 = por %p1493_p2, %p1492_p0 }
  0x32   : > { %p1496_p8 = por %p1495_p6, %p1494_p3 }
  0x34   : > { %p1497_p9 = pnand %p1496_p8, %p1490_p13 }
  0x36   : > { %1500 = shalt.err (!%p1497_p9)
}
  0x37   : > { %s1501_s21 = scalar_lea.vmem %s1691_s30, 128  ;;  %s1559_s10 = smov [#allocation2]  }
  0x38   : > { %p1502_p1 = scmp.ne.s32.totalorder %s1691_s30, %s1501_s21  ;;  %s1506_s11 = sshll.u32 %s1559_s10, 4  ;;  %s1507_s11 = int_to_ptr.vmem [resolvable:$false] %s1506_s11 }
  0x39   : > { %s1508_s12 = scalar_lea.vmem %s1507_s11, 256  ;;  %p1509_p10 = scmp.lt.s32.totalorder %s1691_s30, %s1507_s11 }
  0x3a   : > { %p1504_p4 = pnand %p1502_p1, %p1488_p11  ;;  %p1510_p12 = scmp.lt.s32.totalorder %s1508_s12, %s1501_s21 }
  0x3c   : > { %p1505_p5 = pneg %p1504_p4  ;;  %p1511_p0 = por %p1510_p12, %p1509_p10 }
  0x3e   : > { %p1512_p2 = pnand %p1511_p0, %p1505_p5 }
  0x40   : > { %1515 = shalt.err (!%p1512_p2)
}
  0x41   : > { %1384 = dma.hbm_to_vmem [thread:$0]  (!%p1693_p7), %s1689_s15, 128, %s1691_s30, %s221_s24  }
  0x42   : > { %p1870_p13 = scmp.ne.s32.totalorder %s1867_s27, 0 }
  0x43   : > { %s242_s13 = sand.u32 (!%p1870_p13), 1, %s1546_s22   ;;  %p1871_p11 = scmp.ne.s32.totalorder (!%p1870_p13), %s1866_s26, 0 }
  0x44   : > { %240 = sbr.rel (%p1870_p13) target bundleno = 2028 (0x7ec), region = 44  ;;  %s1249_s14 = sshll.u32 (!%p1870_p13), %s242_s13, 3 }
  0x45   : > { %s243_s29 = scalar_lea.sflag (!%p1870_p13), [#allocation3], %s242_s13  ;;  %s246_s9 = scalar_lea.vmem (!%p1870_p13), [#allocation2], %s1249_s14 }
  0x4b   : > { %1533 = dma.done.wait (%p1871_p11), %s243_s29, 128  }
  0x4c   : > { %1535 = vsyncadd (%p1871_p11), %s243_s29, 4294967168  ;;  %p1872_p3 = scmp.eq.s32.totalorder %s1631_s25, 0 }
  0x4e   : > { %1537 = dma.done.wait (%p1872_p3), [#allocation5], 512   ;;  %p1873_p6 = pmov %p1872_p3 }
  0x4f   : > { %vm285_vm0 = vcmask 261120   ;;  %v1733_v0 = vld [vmem:[%s246_s9] sm:$0xff]  ;;  %v314_v7 = vld [vmem:[%s1859_s3] sm:$0xff]  ;;  %v315_v8 = vld [vmem:[%s1859_s3 + $0x8] sm:$0xff]  ;;  %v1560_v10 = vmov 0.0|0.0   ;;  %vm1561_vm1 = vmmov 0   ;;  %v391_v31 = vlaneseq }
  0x50   : > { %1539 = vsyncadd (%p1873_p6), [#allocation5], 4294966784  ;;  %v286_v1 = vsel %vm285_vm0, %v1733_v0, 0.0  ;;  %v316_v9 = vld [vmem:[%s1859_s3 + $0x10] sm:$0xff]  ;;  %1359 = vmatprep.subr.bf16.mxu0 %v1560_v10  ;;  %v1360_v11 = vpack.c.bf16 %v315_v8, %v314_v7  ;;  %v317_v12 = vld [vmem:[%s1859_s3 + $0x18] sm:$0xff]  ;;  %v1562_v13 = vmov 0.0  }
  0x51   : > { %287 = vadd.xlane.f32.xlu0 %v286_v1  ;;  %1305 = vmatprep.mubr.msk.f32.mxu0 %vm1561_vm1, %v1562_v13  ;;  %v1363_v14 = vpack.c.bf16 %v317_v12, %v316_v9  ;;  %v1252_v19 = vld [vmem:[%s1857_s1] ss:$0 sm:$0xff]  ;;  %s1563_s10 = smov 64   ;;  %s1564_s11 = smov 96   ;;  %vm399_vm2 = vcmask 64512   ;;  %v392_v32 = vshrl.u32 %v391_v31, 7 }
  0x52   : > { %1308 = vmatprep.subr.mxu1 %v1562_v13  ;;  %1310 = vmatprep.mubr.msk.f32.mxu1 %vm1561_vm1, %v1562_v13  ;;  %v1253_v21 = vld [vmem:[%s1858_s2] ss:$0 sm:$0xff]  ;;  %s1565_s12 = smov 88   ;;  %s1566_s13 = smov 120   ;;  %v394_v33 = vand.u32 127, %v391_v31  ;;  %vm1077_vm4 = vcmask 130048  }
  0x53   : > { %1361 = vmatpush3.bf16.msra.mxu0 %v1360_v11  ;;  %s1567_s14 = smov 80   ;;  %s1568_s29 = smov 72   ;;  %vm1079_vm5 = vcmask 195584  }
  0x54   : > { %1362 = vmatprep.subr.bf16.mxu0 %v1560_v10  ;;  %s1569_s9 = smov 104   ;;  %vm395_vm3 = vcmp.ge.s32.totalorder %v392_v32, %v394_v33  ;;  %s1570_s26 = smov 112  }
  0x55   : > { %s1571_s27 = smov 48   ;;  %s1572_s15 = smov 56  }
  0x56   : > { %s1573_s30 = smov 40   ;;  %s1574_s8 = smov 8  }
  0x57   : > { %1364 = vmatpush3.bf16.msra.mxu0 %v1363_v14  ;;  %s1575_s24 = smov 16   ;;  %s1576_s16 = smov 24  }
  0x58   : > { %1328 = vmatprep.subr.mxu0 %v1562_v13  ;;  %p278_p7 = scmp.lt.s32.totalorder %s1631_s25, 1 }
  0x5a   : > { %s1879_s25 = smov (!%p278_p7, %s1631_s25), 1 }
  0x5b   : > { %s1251_s19 = sshll.u32 %s1879_s25, 3 }
  0xde   : > { %v288_v2 = vpop.xlane.xlu0 %287 }
  0xdf   : > { %v290_v3 = vmul.f32 0.03125, %v288_v2 }
  0xe1   : > { %v291_v4 = vsub.f32 %v1733_v0, %v290_v3 }
  0xe3   : > { %v292_v5 = vmul.f32 %v291_v4, %v291_v4 }
  0xe5   : > { %v293_v6 = vsel %vm285_vm0, %v292_v5, 0.0 }
  0xe6   : > { %294 = vadd.xlane.f32.xlu0 %v293_v6 }
 0x173   : > { %v295_v15 = vpop.xlane.xlu0 %294 }
 0x174   : > { %v296_v16 = vmul.f32 0.03125, %v295_v15 }
 0x176   : > { %v297_v17 = vadd.f32 1e-05, %v296_v16 }
 0x178   : > { %1440 = vrsqrt.f32 %v297_v17 }
 0x182   : > { %v1441_v18 = vpop.eup %1440 }
 0x183   : > { %v299_v20 = vmul.f32 %v1441_v18, %v291_v4 }
 0x185   : > { %v306_v22 = vmul.f32 %v1252_v19, %v299_v20 }
 0x187   : > { %v313_v23 = vadd.f32 %v1253_v21, %v306_v22 }
 0x189   : > { %1306 = vmatmul.mubr.msk.f32.vlgmr.msra.gmra.mrb[0].mxu0 %vm285_vm0, %v313_v23  ;;  %v1081_v23 = vld [vmem:[#allocation4] sm:$0xff] }
 0x18a   : > { %1330 = vmatprep.mubr.msk.f32.mxu0 %vm1561_vm1, %v1562_v13 }
 0x25c   : > { %v1768_v24 = vpop.f32.mrb[0].mxu0 }
 0x25d   : > { %485 = vrot.lane.b32.xlu0 %v1768_v24, %s1563_s10  ;;  %397 = vrot.lane.b32.xlu1 %v1768_v24, %s1564_s11  ;;  %v1307_v25 = vpop.f32.mrb[1].mxu0  ;;  %s281_s10 = scalar_lea.vmem %s1862_s6, %s1251_s19 }
 0x261   : > { %565 = vrot.lane.b32.xlu0 %v1768_v24, %s1565_s12 }
 0x265   : > { %563 = vrot.lane.b32.xlu0 %v1768_v24, %s1566_s13 }
 0x269   : > { %732 = vrot.lane.b32.xlu0 %v1768_v24, %s1567_s14 }
 0x26d   : > { %899 = vrot.lane.b32.xlu0 %v1768_v24, %s1568_s29 }
 0x271   : > { %897 = vrot.lane.b32.xlu0 %v1768_v24, %s1569_s9 }
 0x2cf   : > { %v486_v26 = vpop.permute.xlu0 %485  ;;  %v398_v27 = vpop.permute.xlu1 %397 }
 0x2d0   : > { %1309 = vmatpush3.xpose.msk.msra.mxu1 %vm399_vm2, %v398_v27  ;;  %v1084_v27 = vld [vmem:[#allocation4 + $0x18] sm:$0xff] }
 0x2d1   : > { %1313 = vmatprep.subr.mxu1 %v1562_v13 }
 0x2d3   : > { %v566_v28 = vpop.permute.xlu0 %565  ;;  %1311 = vmatmul.mubr.msk.f32.vlgmr.msra.gmra.mrb[0].mxu1 %vm399_vm2, %v1768_v24 }
 0x2d4   : > { %1314 = vmatpush3.msra.mxu1 %v486_v26  ;;  %1315 = vmatprep.mubr.msk.f32.mxu1 %vm1561_vm1, %v1562_v13  ;;  %v1083_v26 = vld [vmem:[#allocation4 + $0x10] sm:$0xff] }
 0x2d5   : > { %1318 = vmatprep.subr.mxu1 %v1562_v13 }
 0x2d7   : > { %v564_v29 = vpop.permute.xlu0 %563 }
 0x2db   : > { %v733_v30 = vpop.permute.xlu0 %732 }
 0x2dc   : > { %1329 = vmatpush3.xpose.msk.msra.mxu0 %vm399_vm2, %v733_v30 }
 0x2dd   : > { %1338 = vmatprep.subr.mxu0 %v1562_v13 }
 0x2df   : > { %v900_v41 = vpop.permute.xlu0 %899 }
 0x2e3   : > { %v898_v44 = vpop.permute.xlu0 %897 }
 0x3a6   : > { %v470_v34 = vpop.f32.mrb[0].mxu1 }
 0x3a7   : > { %v474_v35 = vmul.f32 0.35355338, %v470_v34  ;;  %v1312_v36 = vpop.f32.mrb[1].mxu1 }
 0x3a9   : > { %v475_v37 = vsel %vm395_vm3, %v474_v35, -inf }
 0x3aa   : > { %v476_v38 = vsel %vm399_vm2, %v475_v37, -inf }
 0x3ab   : > { %477 = vmax.xlane.f32.xlu1 %v476_v38 }
 0x3bc   : > { %730 = vrot.lane.b32.xlu1 %v1768_v24, %s1570_s26 }
 0x438   : > { %v478_v39 = vpop.xlane.xlu1 %477 }
 0x439   : > { %v479_v40 = vsub.f32 %v475_v37, %v478_v39 }
 0x43b   : > { %v480_v42 = vmul.f32 1.442695, %v479_v40 }
 0x43c   : > { %v731_v43 = vpop.permute.xlu1 %730 }
 0x43d   : > { %1442 = vpow2.f32 %v480_v42  ;;  %1331 = vmatmul.mubr.msk.f32.vlgmr.msra.gmra.mrb[2].mxu0 %vm399_vm2, %v731_v43 }
 0x43e   : > { %1339 = vmatpush3.xpose.msk.msra.mxu0 %vm399_vm2, %v900_v41  ;;  %1340 = vmatprep.mubr.msk.f32.mxu0 %vm1561_vm1, %v1562_v13 }
 0x43f   : > { %1365 = vmatprep.subr.bf16.mxu0 %v1560_v10 }
 0x441   : > { %1341 = vmatmul.mubr.msk.f32.vlgmr.msra.gmra.mrb[4].mxu0 %vm399_vm2, %v898_v44 }
 0x442   : > { %1356 = vmatprep.mubr.msk.f32.mxu0 %vm1561_vm1, %v1562_v13 }
 0x447   : > { %v1443_v45 = vpop.eup %1442 }
 0x448   : > { %1316 = vmatmul.mubr.msk.f32.vlgmr.msra.gmra.mrb[2].mxu1 %vm399_vm2, %v1443_v45  ;;  %v482_v16 = vsel %vm399_vm2, %v1443_v45, 0.0 }
 0x449   : > { %1319 = vmatpush3.xpose.msk.msra.mxu1 %vm399_vm2, %v566_v28  ;;  %1320 = vmatprep.mubr.msk.f32.mxu1 %vm1561_vm1, %v1562_v13 }
 0x44a   : > { %1323 = vmatprep.subr.mxu1 %v1562_v13 }
 0x44c   : > { %1321 = vmatmul.mubr.msk.f32.vlgmr.msra.gmra.mrb[4].mxu1 %vm399_vm2, %v564_v29  ;;  %v1369_v29 = vpack.c.bf16 %v1084_v27, %v1083_v26 }
 0x44d   : > { %1325 = vmatprep.mubr.msk.f32.mxu1 %vm1561_vm1, %v1562_v13 }
 0x510   : > { %v804_v46 = vpop.f32.mrb[2].mxu0 }
 0x511   : > { %v808_v47 = vmul.f32 0.35355338, %v804_v46  ;;  %v1332_v48 = vpop.f32.mrb[3].mxu0 }
 0x513   : > { %v809_v49 = vsel %vm395_vm3, %v808_v47, -inf }
 0x514   : > { %v971_v50 = vpop.f32.mrb[4].mxu0  ;;  %v810_v51 = vsel %vm399_vm2, %v809_v49, -inf }
 0x515   : > { %v975_v52 = vmul.f32 0.35355338, %v971_v50  ;;  %811 = vmax.xlane.f32.xlu1 %v810_v51  ;;  %v1342_v53 = vpop.f32.mrb[5].mxu0 }
 0x517   : > { %v976_v54 = vsel %vm395_vm3, %v975_v52, -inf }
 0x518   : > { %v977_v55 = vsel %vm399_vm2, %v976_v54, -inf }
 0x519   : > { %978 = vmax.xlane.f32.xlu0 %v977_v55 }
 0x51b   : > { %v1809_v56 = vpop.f32.mrb[2].mxu1 }
 0x51c   : > { %v1317_v57 = vpop.f32.mrb[3].mxu1 }
 0x51f   : > { %v637_v58 = vpop.f32.mrb[4].mxu1 }
 0x520   : > { %v641_v59 = vmul.f32 0.35355338, %v637_v58  ;;  %v1322_v60 = vpop.f32.mrb[5].mxu1 }
 0x522   : > { %v642_v61 = vsel %vm395_vm3, %v641_v59, -inf }
 0x523   : > { %v643_v62 = vsel %vm399_vm2, %v642_v61, -inf }
 0x524   : > { %644 = vmax.xlane.f32.xlu0 %v643_v62 }
 0x526   : > { %819 = vrot.lane.b32.xlu1 %v1768_v24, %s1571_s27 }
 0x53a   : > { %652 = vrot.lane.b32.xlu0 %v1768_v24, %s1572_s15 }
 0x53e   : > { %986 = vrot.lane.b32.xlu0 %v1768_v24, %s1573_s30  ;;  %v1082_v24 = vld [vmem:[#allocation4 + $0x8] sm:$0xff] }
 0x53f   : > { %v1366_v25 = vpack.c.bf16 %v1082_v24, %v1081_v23 }
 0x541   : > { %1367 = vmatpush3.bf16.msra.mxu0 %v1366_v25 }
 0x542   : > { %1368 = vmatprep.subr.bf16.mxu0 %v1560_v10 }
 0x545   : > { %1370 = vmatpush3.bf16.msra.mxu0 %v1369_v29 }
 0x5a2   : > { %v812_v63 = vpop.xlane.xlu1 %811 }
 0x5a3   : > { %v813_v1 = vsub.f32 %v809_v49, %v812_v63  ;;  %v1267_v49 = vld [vmem:[%s1861_s5] ss:$0 sm:$0xff] }
 0x5a5   : > { %v814_v2 = vmul.f32 1.442695, %v813_v1 }
 0x5a6   : > { %v979_v3 = vpop.xlane.xlu0 %978  ;;  %v820_v18 = vpop.permute.xlu1 %819 }
 0x5a7   : > { %1444 = vpow2.f32 %v814_v2  ;;  %v980_v4 = vsub.f32 %v976_v54, %v979_v3 }
 0x5a9   : > { %v981_v5 = vmul.f32 1.442695, %v980_v4 }
 0x5ab   : > { %1446 = vpow2.f32 %v981_v5 }
 0x5b1   : > { %v1445_v6 = vpop.eup %1444  ;;  %v645_v7 = vpop.xlane.xlu0 %644 }
 0x5b2   : > { %v646_v8 = vsub.f32 %v642_v61, %v645_v7  ;;  %v816_v9 = vsel %vm399_vm2, %v1445_v6, 0.0 }
 0x5b3   : > { %817 = vadd.xlane.f32.xlu0 %v816_v9 }
 0x5b4   : > { %v647_v11 = vmul.f32 1.442695, %v646_v8 }
 0x5b5   : > { %v1447_v12 = vpop.eup %1446  ;;  %v653_v14 = vpop.permute.xlu0 %652 }
 0x5b6   : > { %1448 = vpow2.f32 %v647_v11  ;;  %1324 = vmatpush3.msra.mxu1 %v653_v14  ;;  %v983_v15 = vsel %vm399_vm2, %v1447_v12, 0.0 }
 0x5b7   : > { %984 = vadd.xlane.f32.xlu0 %v983_v15  ;;  %1333 = vmatprep.subr.mxu1 %v1562_v13 }
 0x5b9   : > { %v987_v20 = vpop.permute.xlu0 %986 }
 0x5bb   : > { %483 = vadd.xlane.f32.xlu0 %v482_v16 }
 0x5c0   : > { %v1449_v17 = vpop.eup %1448 }
 0x5c1   : > { %1326 = vmatmul.mubr.msk.f32.vlgmr.msra.gmra.mrb[6].mxu1 %vm399_vm2, %v1449_v17  ;;  %v649_v19 = vsel %vm399_vm2, %v1449_v17, 0.0 }
 0x5c2   : > { %1334 = vmatpush3.msra.mxu1 %v820_v18  ;;  %650 = vadd.xlane.f32.xlu1 %v649_v19 }
 0x5c3   : > { %1335 = vmatprep.mubr.msk.f32.mxu1 %vm1561_vm1, %v1562_v13  ;;  %1343 = vmatprep.subr.mxu1 %v1562_v13 }
 0x5c5   : > { %1336 = vmatmul.mubr.msk.f32.vlgmr.msra.gmra.mrb[8].mxu1 %vm399_vm2, %v1445_v6 }
 0x5c6   : > { %1344 = vmatpush3.msra.mxu1 %v987_v20  ;;  %1345 = vmatprep.mubr.msk.f32.mxu1 %vm1561_vm1, %v1562_v13 }
 0x5c9   : > { %1346 = vmatmul.mubr.msk.f32.vlgmr.msra.gmra.mrb[10].mxu1 %vm399_vm2, %v1447_v12 }
 0x640   : > { %v818_v22 = vpop.xlane.xlu0 %817 }
 0x644   : > { %v985_v28 = vpop.xlane.xlu0 %984 }
 0x648   : > { %v484_v40 = vpop.xlane.xlu0 %483 }
 0x64f   : > { %v651_v21 = vpop.xlane.xlu1 %650 }
 0x650   : > { %1450 = vrcp.f32 %v651_v21 }
 0x651   : > { %1452 = vrcp.f32 %v818_v22 }
 0x652   : > { %1454 = vrcp.f32 %v985_v28 }
 0x653   : > { %1456 = vrcp.f32 %v484_v40 }
 0x65a   : > { %v1451_v30 = vpop.eup %1450 }
 0x65b   : > { %v1453_v33 = vpop.eup %1452 }
 0x65c   : > { %v1455_v37 = vpop.eup %1454 }
 0x65d   : > { %v1457_v41 = vpop.eup %1456 }
 0x65e   : > { %v562_v43 = vmul.f32 %v1457_v41, %v1809_v56 }
 0x694   : > { %v724_v13 = vpop.f32.mrb[6].mxu1 }
 0x695   : > { %v729_v31 = vmul.f32 %v1451_v30, %v724_v13  ;;  %v1327_v32 = vpop.f32.mrb[7].mxu1 }
 0x697   : > { %1065 = vrot.lane.b32.xlu1 %v729_v31, %s1574_s8 }
 0x698   : > { %v891_v34 = vpop.f32.mrb[8].mxu1 }
 0x699   : > { %v896_v35 = vmul.f32 %v1453_v33, %v891_v34  ;;  %v1337_v36 = vpop.f32.mrb[9].mxu1 }
 0x69b   : > { %1069 = vrot.lane.b32.xlu0 %v896_v35, %s1575_s24 }
 0x69c   : > { %v1058_v10 = vpop.f32.mrb[10].mxu1 }
 0x69d   : > { %v1063_v38 = vmul.f32 %v1455_v37, %v1058_v10  ;;  %v1347_v39 = vpop.f32.mrb[11].mxu1 }
 0x69f   : > { %1073 = vrot.lane.b32.xlu1 %v1063_v38, %s1576_s16 }
 0x709   : > { %v1066_v42 = vpop.permute.xlu1 %1065 }
 0x70a   : > { %v1076_v45 = vsel %vm399_vm2, %v562_v43, %v1066_v42 }
 0x70d   : > { %v1070_v44 = vpop.permute.xlu0 %1069 }
 0x70e   : > { %v1078_v46 = vsel %vm1077_vm4, %v1076_v45, %v1070_v44 }
 0x711   : > { %v1074_v47 = vpop.permute.xlu1 %1073 }
 0x712   : > { %v1080_v48 = vsel %vm1079_vm5, %v1078_v46, %v1074_v47 }
 0x713   : > { %1357 = vmatmul.mubr.msk.f32.vlgmr.msra.gmra.mrb[6].mxu0 %vm285_vm0, %v1080_v48 }
 0x7e6   : > { %v1161_v50 = vpop.f32.mrb[6].mxu0 }
 0x7e7   : > { %v1162_v51 = vadd.f32 %v1267_v49, %v1161_v50  ;;  %v1358_v52 = vpop.f32.mrb[7].mxu0 }
 0x7e9   : > { %v1165_v53 = vadd.f32 %v1162_v51, %v1733_v0 }
 0x7eb   : > { %1166 = vst.msk [vmem:[%s281_s10] sm:$0xff] %vm285_vm0, %v1165_v53 }
 0x7ec PF: > { %p17_p8 = scmp.ge.s32.totalorder %s1656_s7, 4   ;;  %s1874_s21 = smov %s1546_s22 }
 0x7ed   : > { %s1875_s22 = smov %s1550_s23  ;;  %s1876_s23 = smov %s1682_s28 }
 0x7ee   : > { %s1877_s24 = smov %s1656_s7  ;;  %19 = sbr.rel (!%p17_p8) target bundleno = 4 (0x4), region = 88 }
 0x7f5   :  { %1186 = vsyncpa [#allocation3], 1 }
 0x7f6   :  { %1188 = vsyncpa [#allocation3 + $0x1], 1 }
 0x7f7   :  { %1189 = vsyncpa [#allocation5], 1 }

</bundles_post_ra>
